<compile_context>
chip_gen: v5e
topology: v5e:2x2
jax: 0.10.0
libtpu: 0.0.40
codegen_flags: <defaults>
</compile_context>

<pallas_src>
import jax
import jax.numpy as jnp
from jax.experimental import pallas as pl
from jax.experimental.pallas import tpu as pltpu


# --------------------------------------------------------------------------
# Kernels
# --------------------------------------------------------------------------
def _linear_relu_kernel_f32out(x_ref, w_ref, b_ref, o_ref):
    """Accumulate directly into the (f32, K-resident) output block."""
    k = pl.program_id(2)

    @pl.when(k == 0)
    def _init():
        o_ref[...] = jnp.zeros_like(o_ref)

    o_ref[...] += jnp.dot(
        x_ref[...], w_ref[...], preferred_element_type=jnp.float32
    )

    @pl.when(k == pl.num_programs(2) - 1)
    def _epilogue():
        # Bias add + ReLU once per output tile.
        o_ref[...] = jnp.maximum(o_ref[...] + b_ref[...], 0.0)


def _linear_relu_kernel_acc(x_ref, w_ref, b_ref, o_ref, acc_ref):
    """f32 scratch accumulator; final bias+ReLU+cast for non-f32 outputs."""
    k = pl.program_id(2)

    @pl.when(k == 0)
    def _init():
        acc_ref[...] = jnp.zeros_like(acc_ref)

    acc_ref[...] += jnp.dot(
        x_ref[...], w_ref[...], preferred_element_type=jnp.float32
    )

    @pl.when(k == pl.num_programs(2) - 1)
    def _epilogue():
        o_ref[...] = jnp.maximum(acc_ref[...] + b_ref[...], 0.0).astype(o_ref.dtype)


# --------------------------------------------------------------------------
# Helpers
# --------------------------------------------------------------------------
def _round_up(x, m):
    return ((x + m - 1) // m) * m


def _sublane(dtype):
    """Native sublane packing: 8 rows (f32), 16 (bf16), 32 (int8/fp8)."""
    bits = jnp.dtype(dtype).itemsize * 8
    return {32: 8, 16: 16, 8: 32}.get(bits, 8)


def _pick_tile(dim_padded, max_tile, unit):
    """Largest multiple-of-`unit` divisor of dim_padded that is <= max_tile.

    Returns dim_padded itself when it already fits (single block, zero waste).
    """
    if dim_padded <= max_tile:
        return dim_padded
    best = unit
    t = unit
    while t <= max_tile:
        if dim_padded % t == 0:
            best = t
        t += unit
    return best


def _vmem_limit_bytes():
    """~Half of physical VMEM: 64 MiB on 128-MiB v5e/v6e, 32 MiB on v7x."""
    try:
        cap = int(pltpu.get_tpu_info().vmem_capacity_bytes)
    except Exception:
        cap = 64 * 1024 * 1024  # conservative fallback
    return max(32 * 1024 * 1024, min(100 * 1024 * 1024, cap // 2))


def prepare_params(weight, bias, *, compute_dtype=None):
    """Pad/cast the static layer parameters ONCE (not per forward call)."""
    in_units, units = weight.shape
    k_p = _round_up(in_units, 128)
    n_p = _round_up(units, 128)
    w_p = weight
    if (k_p, n_p) != (in_units, units):
        w_p = jnp.pad(weight, ((0, k_p - in_units), (0, n_p - units)))
    if compute_dtype is not None:
        w_p = w_p.astype(compute_dtype)
    b_p = bias if n_p == units else jnp.pad(bias, (0, n_p - units))
    b2d = b_p.astype(jnp.float32).reshape(1, n_p)
    return w_p, b2d, (in_units, units)


# --------------------------------------------------------------------------
# Forward: relu(X @ W + b)
# --------------------------------------------------------------------------
def my_linear(x, weight, bias, *, compute_dtype=None, prepared=None,
              tm_max=512, tn_max=512, tk_max=None, force_pallas=False):
    """Pallas equivalent of MyLinear.forward: relu(x @ weight + bias)."""
    batch, in_units = x.shape
    out_dtype = x.dtype

    if prepared is None:
        prepared = prepare_params(weight, bias, compute_dtype=compute_dtype)
    w_p, b2d, (in_units_w, units) = prepared
    assert in_units == in_units_w
    k_p, n_p = w_p.shape

    sub = _sublane(w_p.dtype)          # MXU-operand dtype drives sublane packing
    m_p = _round_up(batch, sub)

    # Small-problem fast path: below a few million MACs, pallas_call launch +
    # per-step overhead dominates and XLA fusion wins outright.
    if not force_pallas and m_p * n_p * k_p < (1 << 21):
        y = jnp.dot(x, weight, preferred_element_type=jnp.float32) + bias
        return jnp.maximum(y, 0.0).astype(out_dtype)

    vmem_limit = _vmem_limit_bytes()
    if tk_max is None:
        # Bigger K tiles when VMEM allows (fewer accumulator writeback passes;
        # matters most on v5e's single vst slot).
        tk_max = 2048 if vmem_limit >= (64 << 20) else 1024

    # Pad X: M to the dtype-aware sublane multiple, K to 128 (matches w_p).
    x_p = x
    if x_p.dtype != w_p.dtype:
        x_p = x_p.astype(w_p.dtype)    # bf16 compute path; accumulation stays f32
    if (m_p, k_p) != (batch, in_units):
        x_p = jnp.pad(x_p, ((0, m_p - batch), (0, k_p - in_units)))

    # Tiles are exact divisors of the rounded dims -> no padding waste.
    # tm == m_p when the whole batch fits one M tile -> W streams from HBM once.
    tm = _pick_tile(m_p, tm_max, sub)
    tn = _pick_tile(n_p, tn_max, 128)
    tk = _pick_tile(k_p, tk_max, 128)

    # v7x megacore: ensure the parallel (M, N) grid has >= 2 steps so both
    # TensorCores get work; harmless (one extra tiny step) on v5e/v6e.
    if (m_p // tm) * (n_p // tn) == 1:
        if m_p > sub:
            tm = _pick_tile(m_p, m_p // 2, sub)
        elif n_p > 128:
            tn = _pick_tile(n_p, n_p // 2, 128)

    grid = (m_p // tm, n_p // tn, k_p // tk)

    cost = pl.CostEstimate(
        flops=2 * m_p * n_p * k_p,
        transcendentals=0,
        bytes_accessed=int(x_p.size * x_p.dtype.itemsize
                           + w_p.size * w_p.dtype.itemsize
                           + m_p * n_p * jnp.dtype(out_dtype).itemsize
                           + b2d.size * 4),
    )

    in_specs = [
        pl.BlockSpec((tm, tk), lambda i, j, k: (i, k)),
        pl.BlockSpec((tk, tn), lambda i, j, k: (k, j)),
        # Bias: resident across K, one DMA per N tile.
        pl.BlockSpec((1, tn), lambda i, j, k: (0, j)),
    ]
    out_spec = pl.BlockSpec((tm, tn), lambda i, j, k: (i, j))

    if out_dtype == jnp.float32:
        kernel = _linear_relu_kernel_f32out   # accumulate in-place in o_ref
        scratch = []
    else:
        kernel = _linear_relu_kernel_acc
        scratch = [pltpu.VMEM((tm, tn), jnp.float32)]

    out_padded = pl.pallas_call(
        kernel,
        out_shape=jax.ShapeDtypeStruct((m_p, n_p), out_dtype),
        grid_spec=pltpu.PrefetchScalarGridSpec(
            num_scalar_prefetch=0,
            grid=grid,
            in_specs=in_specs,
            out_specs=out_spec,
            scratch_shapes=scratch,
        ),
        compiler_params=pltpu.CompilerParams(
            # M/N parallel (v7x dual-TC sharding), K reduction arbitrary.
            dimension_semantics=("parallel", "parallel", "arbitrary"),
            vmem_limit_bytes=vmem_limit,
        ),
        cost_estimate=cost,
    )(x_p, w_p, b2d)

    return out_padded[:batch, :units]


def my_linear_ref(x, weight, bias):
    return jnp.maximum(x @ weight + bias, 0.0)


# --------------------------------------------------------------------------
if __name__ == "__main__":
    key = jax.random.PRNGKey(0)
    k_x, k_w, k_b = jax.random.split(key, 3)

    # Matches the module's example: MyLinear(5, 3); small batch of 8.
    batch, in_units, units = 8, 5, 3
    x = jax.random.normal(k_x, (batch, in_units), dtype=jnp.float32)
    weight = jax.random.normal(k_w, (in_units, units), dtype=jnp.float32)
    bias = jax.random.normal(k_b, (units,), dtype=jnp.float32)

    ref = my_linear_ref(x, weight, bias)

    # 1) Default path: tiny problem takes the XLA fast path.
    out_fast = jax.block_until_ready(my_linear(x, weight, bias))
    assert out_fast.shape == (batch, units) and out_fast.dtype == x.dtype
    assert jnp.allclose(out_fast, ref, atol=1e-5, rtol=1e-5), "fast-path mismatch"

    # 2) Force the Pallas kernel at the module's toy size (params padded once).
    params = prepare_params(weight, bias)
    out_pallas = jax.block_until_ready(
        my_linear(x, weight, bias, prepared=params, force_pallas=True))
    assert out_pallas.shape == (batch, units) and out_pallas.dtype == x.dtype
    assert jnp.allclose(out_pallas, ref, atol=1e-5, rtol=1e-5), "pallas mismatch"

    # 3) Tile-crossing shape; non-power-of-two N=640 exercises the
    #    divisor-based tile selection (n_p=640 -> tn=128, zero padding waste).
    kb_x, kb_w, kb_b = jax.random.split(jax.random.PRNGKey(1), 3)
    B2, K2, N2 = 256, 1024, 640
    x2 = jax.random.normal(kb_x, (B2, K2), dtype=jnp.float32)
    w2 = jax.random.normal(kb_w, (K2, N2), dtype=jnp.float32)
    b2 = jax.random.normal(kb_b, (N2,), dtype=jnp.float32)
    params2 = prepare_params(w2, b2)
    out2 = jax.block_until_ready(my_linear(x2, w2, b2, prepared=params2))
    ref2 = my_linear_ref(x2, w2, b2)
    assert jnp.allclose(out2, ref2, atol=1e-3, rtol=1e-3), "large mismatch"

    # 4) bf16 compute path (bf16 operands, f32 accumulation, f32 output).
    params2_bf16 = prepare_params(w2, b2, compute_dtype=jnp.bfloat16)
    out2_bf16 = jax.block_until_ready(my_linear(x2, w2, b2, prepared=params2_bf16))
    assert out2_bf16.dtype == jnp.float32
    max_err = float(jnp.max(jnp.abs(out2_bf16 - ref2)))
    assert max_err < 2.0, f"bf16 path error too large: {max_err}"

    print("KERNEL_OK")
</pallas_src>

<mosaic_0001>
module attributes {stable_mosaic.version = 11 : i64} {
  func.func @_linear_relu_kernel_f32out(%arg0: i32, %arg1: i32, %arg2: i32, %arg3: memref<8x128xf32, #tpu.memory_space<vmem>>, %arg4: memref<128x128xf32, #tpu.memory_space<vmem>>, %arg5: memref<1x128xf32, #tpu.memory_space<vmem>>, %arg6: memref<8x128xf32, #tpu.memory_space<vmem>>) attributes {dimension_semantics = [#tpu.dimension_semantics<parallel>, #tpu.dimension_semantics<parallel>, #tpu.dimension_semantics<arbitrary>], iteration_bounds = array<i64: 1, 1, 1>, scalar_prefetch = 0 : i64, scratch_operands = 0 : i64, tpu.core_type = #tpu.core_type<tc>, window_params = [{transform_indices = @transform_0, window_bounds = array<i64: 8, 128>}, {transform_indices = @transform_1, window_bounds = array<i64: 128, 128>}, {transform_indices = @transform_2, window_bounds = array<i64: 1, 128>}, {transform_indices = @transform_3, window_bounds = array<i64: 8, 128>}]} {
    %c0_i32 = arith.constant 0 : i32
    %0 = arith.cmpi eq, %arg2, %c0_i32 : i32
    %1 = arith.extui %0 : i1 to i32
    %c0_i32_0 = arith.constant 0 : i32
    %2 = arith.cmpi ne, %1, %c0_i32_0 : i32
    scf.if %2 {
      %cst_10 = arith.constant 0.000000e+00 : f32
      %12 = vector.broadcast %cst_10 : f32 to vector<8x128xf32>
      %c0_11 = arith.constant 0 : index
      %c0_12 = arith.constant 0 : index
      %13 = vector.load %arg6[%c0_11, %c0_12] : memref<8x128xf32, #tpu.memory_space<vmem>>, vector<8x128xf32>
      tpu.vector_store %arg6[%c0_11, %c0_12], %12 {strides = array<i32>} : memref<8x128xf32, #tpu.memory_space<vmem>>, vector<8x128xf32>,
    } else {
    }
    %c0 = arith.constant 0 : index
    %c0_1 = arith.constant 0 : index
    %3 = vector.load %arg6[%c0, %c0_1] : memref<8x128xf32, #tpu.memory_space<vmem>>, vector<8x128xf32>
    %c0_2 = arith.constant 0 : index
    %c0_3 = arith.constant 0 : index
    %4 = vector.load %arg3[%c0_2, %c0_3] : memref<8x128xf32, #tpu.memory_space<vmem>>, vector<8x128xf32>
    %c0_4 = arith.constant 0 : index
    %c0_5 = arith.constant 0 : index
    %5 = vector.load %arg4[%c0_4, %c0_5] : memref<128x128xf32, #tpu.memory_space<vmem>>, vector<128x128xf32>
    %cst = arith.constant dense<0.000000e+00> : vector<8x128xf32>
    %6 = tpu.matmul %4, %5, %cst {dimension_numbers = #tpu.dot_dimension_numbers<[1], [0], [0], [1], [0, 0, 1, 1], [], []>} : vector<8x128xf32>, vector<128x128xf32>, vector<8x128xf32> -> vector<8x128xf32>
    %7 = arith.addf %3, %6 : vector<8x128xf32>
    %c0_6 = arith.constant 0 : index
    %c0_7 = arith.constant 0 : index
    %8 = vector.load %arg6[%c0_6, %c0_7] : memref<8x128xf32, #tpu.memory_space<vmem>>, vector<8x128xf32>
    tpu.vector_store %arg6[%c0_6, %c0_7], %7 {strides = array<i32>} : memref<8x128xf32, #tpu.memory_space<vmem>>, vector<8x128xf32>,
    %c0_i32_8 = arith.constant 0 : i32
    %9 = arith.cmpi eq, %arg2, %c0_i32_8 : i32
    %10 = arith.extui %9 : i1 to i32
    %c0_i32_9 = arith.constant 0 : i32
    %11 = arith.cmpi ne, %10, %c0_i32_9 : i32
    scf.if %11 {
      %c0_10 = arith.constant 0 : index
      %c0_11 = arith.constant 0 : index
      %12 = vector.load %arg6[%c0_10, %c0_11] : memref<8x128xf32, #tpu.memory_space<vmem>>, vector<8x128xf32>
      %c0_12 = arith.constant 0 : index
      %c0_13 = arith.constant 0 : index
      %13 = vector.load %arg5[%c0_12, %c0_13] : memref<1x128xf32, #tpu.memory_space<vmem>>, vector<1x128xf32>
      %14 = vector.broadcast %13 : vector<1x128xf32> to vector<8x128xf32>
      %15 = arith.addf %12, %14 : vector<8x128xf32>
      %cst_14 = arith.constant 0.000000e+00 : f32
      %16 = vector.broadcast %cst_14 : f32 to vector<8x128xf32>
      %17 = arith.maximumf %15, %16 : vector<8x128xf32>
      %c0_15 = arith.constant 0 : index
      %c0_16 = arith.constant 0 : index
      %18 = vector.load %arg6[%c0_15, %c0_16] : memref<8x128xf32, #tpu.memory_space<vmem>>, vector<8x128xf32>
      tpu.vector_store %arg6[%c0_15, %c0_16], %17 {strides = array<i32>} : memref<8x128xf32, #tpu.memory_space<vmem>>, vector<8x128xf32>,
    } else {
    }
    return
  }
  func.func @transform_0(%arg0: i32, %arg1: i32, %arg2: i32) -> (i32, i32) {
    %c0_i32 = arith.constant 0 : i32
    return %arg0, %arg2 : i32, i32
  }
  func.func @transform_1(%arg0: i32, %arg1: i32, %arg2: i32) -> (i32, i32) {
    %c0_i32 = arith.constant 0 : i32
    return %arg2, %arg1 : i32, i32
  }
  func.func @transform_2(%arg0: i32, %arg1: i32, %arg2: i32) -> (i32, i32) {
    %c0_i32 = arith.constant 0 : i32
    %c0_i32_0 = arith.constant 0 : i32
    return %c0_i32, %arg1 : i32, i32
  }
  func.func @transform_3(%arg0: i32, %arg1: i32, %arg2: i32) -> (i32, i32) {
    %c0_i32 = arith.constant 0 : i32
    return %arg0, %arg1 : i32, i32
  }
}

</mosaic_0001>

<bundles_post_ra>
// kernel: tpu_custom_call.1
= control target key start
LH: loop header
LB: loop body
LE: loop exit
PB: predicated region body
PF: predicated region fallthrough
CT: control target
= control target key end

     0   :  { %8 = vsyncpa [#allocation3], 0  ;;  %s241_s0 = inlined_call_operand.hbm [shape: f32[8,128], index: 0, kind: input, shape index: {}]   ;;  %s242_s1 = inlined_call_operand.hbm [shape: f32[128,128], index: 1, kind: input, shape index: {}]   ;;  %s243_s2 = inlined_call_operand.vmem [shape: f32[1,128], index: 2, kind: input, shape index: {}]   ;;  %s244_s3 = inlined_call_operand.hbm [shape: f32[8,128], index: 3, kind: output, shape index: {}]  }
   0x1   :  { %9 = vsyncpa [#allocation6], 0 }
   0x2   :  { %10 = vsyncpa [#allocation4], 0  ;;  %s16_s14 = sshll.u32 %s241_s0, 4  ;;  %s204_s15 = smov [#allocation2]   ;;  %s17_s14 = int_to_ptr.hbm [resolvable:$true] %s16_s14 }
   0x3   :  { %s18_s16 = sshll.u32 %s204_s15, 4  ;;  %s26_s19 = sshll.u32 %s242_s1, 4  ;;  %s19_s16 = int_to_ptr.vmem [resolvable:$true] %s18_s16  ;;  %s27_s19 = int_to_ptr.hbm [resolvable:$true] %s26_s19 }
   0x4   :  { %21 = dma.hbm_to_vmem [thread:$0]  %s17_s14, 128, %s19_s16, [#allocation3]  }
   0x5   :  { %s205_s20 = smov [#allocation5]   ;;  %s206_s22 = smov 128  }
   0x6   :  { %s28_s21 = sshll.u32 %s205_s20, 4  ;;  %s207_s23 = smov 8   ;;  %s29_s21 = int_to_ptr.vmem [resolvable:$true] %s28_s21 }
   0x7   :  { %34 = dma.hbm_to_vmem [thread:$0]  %s27_s19, 2048, %s29_s21, [#allocation6], %s206_s22, %s206_s22, %s207_s23  }
   0x8   :  { %198 = dma.done.wait [#allocation3], 128  }
   0x9   :  { %199 = vsyncadd [#allocation3], 4294967168 }
   0xa   :  { %200 = dma.done.wait [#allocation6], 2048  }
   0xb   :  { %201 = vsyncadd [#allocation6], 4294965248  ;;  %v67_v0 = vld [vmem:[#allocation5 + $0x78] sm:$0xff]  ;;  %v66_v1 = vld [vmem:[#allocation5 + $0x70] sm:$0xff]  ;;  %s208_s24 = smov [#allocation7]   ;;  %s108_s28 = sshll.u32 %s244_s3, 4  ;;  %s109_s28 = int_to_ptr.hbm [resolvable:$true] %s108_s28 }
   0xc   :  { %68 = vmatpush.msra.mxu0 %v67_v0  ;;  %v65_v2 = vld [vmem:[#allocation5 + $0x68] sm:$0xff]  ;;  %v64_v3 = vld [vmem:[#allocation5 + $0x60] sm:$0xff]  ;;  %v63_v4 = vld [vmem:[#allocation5 + $0x58] sm:$0xff]  ;;  %s106_s25 = sshll.u32 %s208_s24, 4  ;;  %s107_s25 = int_to_ptr.vmem [resolvable:$true] %s106_s25 }
   0xd   :  { %v62_v5 = vld [vmem:[#allocation5 + $0x50] sm:$0xff]  ;;  %v61_v6 = vld [vmem:[#allocation5 + $0x48] sm:$0xff]  ;;  %v60_v7 = vld [vmem:[#allocation5 + $0x40] sm:$0xff] }
   0xe   :  { %69 = vmatpush.msra.mxu0 %v66_v1  ;;  %v59_v8 = vld [vmem:[#allocation5 + $0x38] sm:$0xff]  ;;  %v58_v9 = vld [vmem:[#allocation5 + $0x30] sm:$0xff]  ;;  %v57_v10 = vld [vmem:[#allocation5 + $0x28] sm:$0xff] }
   0xf   :  { %v56_v11 = vld [vmem:[#allocation5 + $0x20] sm:$0xff]  ;;  %v55_v12 = vld [vmem:[#allocation5 + $0x18] sm:$0xff]  ;;  %v54_v13 = vld [vmem:[#allocation5 + $0x10] sm:$0xff] }
  0x10   :  { %70 = vmatpush.msra.mxu0 %v65_v2  ;;  %v53_v14 = vld [vmem:[#allocation5 + $0x8] sm:$0xff]  ;;  %v52_v15 = vld [vmem:[#allocation5] sm:$0xff]  ;;  %v51_v16 = vld [vmem:[#allocation2] sm:$0xff] }
  0x11   :  { %v125_v17 = vld [vmem:[%s243_s2] ss:$0 sm:$0xff] }
  0x12   :  { %71 = vmatpush.msra.mxu0 %v64_v3 }
  0x14   :  { %72 = vmatpush.msra.mxu0 %v63_v4 }
  0x16   :  { %73 = vmatpush.msra.mxu0 %v62_v5 }
  0x18   :  { %74 = vmatpush.msra.mxu0 %v61_v6 }
  0x1a   :  { %75 = vmatpush.msra.mxu0 %v60_v7 }
  0x1c   :  { %76 = vmatpush.msra.mxu0 %v59_v8 }
  0x1e   :  { %77 = vmatpush.msra.mxu0 %v58_v9 }
  0x20   :  { %78 = vmatpush.msra.mxu0 %v57_v10 }
  0x22   :  { %79 = vmatpush.msra.mxu0 %v56_v11 }
  0x24   :  { %80 = vmatpush.msra.mxu0 %v55_v12 }
  0x26   :  { %81 = vmatpush.msra.mxu0 %v54_v13 }
  0x28   :  { %82 = vmatpush.msra.mxu0 %v53_v14 }
  0x2a   :  { %83 = vmatpush.msra.mxu0 %v52_v15 }
  0x2b   :  { %84 = vmatmul.f32.vlgmr.msra.gmra.mxu0 %v51_v16 }
  0xa8   :  { %v85_v18 = vpop.f32.mrf.mxu0 }
  0xa9   :  { %v98_v19 = vadd.f32 %v125_v17, %v85_v18 }
  0xab   :  { %v99_v20 = vmax.f32 %v98_v19, 0.0 }
  0xad   :  { %100 = vst [vmem:[#allocation7] sm:$0xff] %v99_v20 }
  0xae   :  { %111 = dma.vmem_to_hbm [thread:$0]  %s107_s25, 128, %s109_s28, [#allocation4]  }
  0xaf   :  { %202 = dma.done.wait [#allocation4], 128  }
  0xb0   :  { %203 = vsyncadd [#allocation4], 4294967168 }
  0xb1   :  { %116 = vsyncpa [#allocation3], 1 }
  0xb2   :  { %117 = vsyncpa [#allocation6], 1 }
  0xb3   :  { %118 = vsyncpa [#allocation4], 1 }

</bundles_post_ra>
